<compile_context>
chip_gen: v7x
topology: tpu7x:2x2x1
jax: 0.10.0
libtpu: 0.0.40
codegen_flags: <defaults>
</compile_context>

<pallas_src>
import jax
import jax.numpy as jnp
from jax.experimental import pallas as pl
from jax.experimental.pallas import tpu as pltpu


_LANES = 512              # lane-dense last dim (multiple of 128)
_MAX_BLOCK_ROWS = 1024    # 1024 x 512 x 4 B = 2 MiB per f32 buffer


def _round_up(n: int, m: int) -> int:
    return ((n + m - 1) // m) * m


def _gaussian_kernel_body(params_ref, x_ref, o_ref):
    # params_ref (SMEM scalar prefetch): [mu, scale] with scale = -1/(2*sigma^2).
    mu = params_ref[0]
    scale = params_ref[1]
    # Compute in f32 (no-op cast for f32 inputs; v5e has no bf16 VPU/EUP).
    x = x_ref[...].astype(jnp.float32)
    d = x - mu
    o_ref[...] = jnp.exp((d * d) * scale).astype(o_ref.dtype)


def gaussian_kernel(x: jax.Array, mu: float = 1.0, sigma: float = 1.0) -> jax.Array:
    """Elementwise exp(-(x - mu)^2 / (2 sigma^2)) via a Pallas TPU kernel.

    Accepts any shape / float dtype; views x as a lane-dense [rows, 512] slab
    (padding only the ragged tail) and streams it through VMEM in row tiles.
    """
    orig_shape = x.shape
    orig_dtype = x.dtype
    n = int(x.size)

    # Sublane alignment depends on dtype packing (8 for 4-byte, 16 for 2-byte, ...).
    itemsize = jnp.dtype(orig_dtype).itemsize
    sub_align = max(8, 32 // itemsize)

    rows = -(-n // _LANES)                  # ceil(n / LANES)
    n_padded = rows * _LANES

    # Exact fits skip host-side pad/slice entirely; ragged sizes pad < LANES elems.
    # TODO(synk): in-kernel tail masking (scalar-prefetch the valid count) would
    # avoid even this small pad copy for ragged sizes.
    needs_pad = n_padded != n
    if needs_pad:
        x2d = jnp.pad(x.reshape(-1), (0, n_padded - n)).reshape(rows, _LANES)
    else:
        x2d = x.reshape(rows, _LANES)

    # Row tile: multiple of sublane alignment, capped for VMEM, and split into
    # >=4 grid steps when possible so v7x megacore can shard the parallel axis.
    target = max(sub_align, _round_up(-(-rows // 4), sub_align))
    block_rows = min(_MAX_BLOCK_ROWS, target)
    if block_rows >= rows:
        block_rows = rows               # full-extent block (always layout-legal)
    grid = (pl.cdiv(rows, block_rows),)

    # Negation folded into the constant: exp(d*d*scale).
    params = jnp.array([float(mu), -1.0 / (2.0 * float(sigma) ** 2)],
                       dtype=jnp.float32)

    out2d = pl.pallas_call(
        _gaussian_kernel_body,
        out_shape=jax.ShapeDtypeStruct((rows, _LANES), orig_dtype),
        grid_spec=pltpu.PrefetchScalarGridSpec(
            num_scalar_prefetch=1,
            grid=grid,
            in_specs=[pl.BlockSpec((block_rows, _LANES), lambda r, params: (r, 0))],
            out_specs=pl.BlockSpec((block_rows, _LANES), lambda r, params: (r, 0)),
        ),
        compiler_params=pltpu.CompilerParams(
            dimension_semantics=("parallel",),
        ),
    )(params, x2d)

    if needs_pad:
        return out2d.reshape(-1)[:n].reshape(orig_shape)
    return out2d.reshape(orig_shape)


if __name__ == "__main__":
    # GaussianKernel has no learnable parameters; mu/sigma are fixed scalars.
    mu, sigma = 1.0, 1.0
    key = jax.random.PRNGKey(0)

    # KNRM-style matching matrix: batch=2, q_len=8, d_len=128 (exact-fit path).
    x = jax.random.normal(key, (2, 8, 128), dtype=jnp.float32)
    out = jax.block_until_ready(gaussian_kernel(x, mu=mu, sigma=sigma))
    ref = jnp.exp(-((x - mu) ** 2) / (2.0 * sigma ** 2))
    assert out.shape == x.shape and out.dtype == x.dtype
    assert jnp.allclose(out, ref, atol=1e-6, rtol=1e-6)

    # Ragged KNRM shape (d_len not a multiple of 128) exercises the tail-pad
    # and masked partial-last-block paths; also reuses the compiled kernel
    # with different (mu, sigma) thanks to SMEM scalar params.
    x2 = jax.random.normal(jax.random.PRNGKey(1), (2, 16, 200), dtype=jnp.float32)
    out2 = jax.block_until_ready(gaussian_kernel(x2, mu=0.5, sigma=0.1))
    ref2 = jnp.exp(-((x2 - 0.5) ** 2) / (2.0 * 0.1 ** 2))
    assert out2.shape == x2.shape and out2.dtype == x2.dtype
    assert jnp.allclose(out2, ref2, atol=1e-6, rtol=1e-6)

    print("KERNEL_OK")
</pallas_src>

<mosaic_0001>
module attributes {stable_mosaic.version = 11 : i64} {
  func.func @_gaussian_kernel_body(%arg0: i32, %arg1: memref<2xf32, #tpu.memory_space<smem>>, %arg2: memref<4x512xf32, #tpu.memory_space<vmem>>, %arg3: memref<4x512xf32, #tpu.memory_space<vmem>>) attributes {dimension_semantics = [#tpu.dimension_semantics<parallel>], iteration_bounds = array<i64: 1>, scalar_prefetch = 1 : i64, scratch_operands = 0 : i64, tpu.core_type = #tpu.core_type<tc>, window_params = [{transform_indices = @transform_0, window_bounds = array<i64: 4, 512>}, {transform_indices = @transform_1, window_bounds = array<i64: 4, 512>}]} {
    %c0 = arith.constant 0 : index
    %0 = memref.load %arg1[%c0] : memref<2xf32, #tpu.memory_space<smem>>
    %c1 = arith.constant 1 : index
    %1 = memref.load %arg1[%c1] : memref<2xf32, #tpu.memory_space<smem>>
    %c0_0 = arith.constant 0 : index
    %c0_1 = arith.constant 0 : index
    %2 = vector.load %arg2[%c0_0, %c0_1] : memref<4x512xf32, #tpu.memory_space<vmem>>, vector<4x512xf32>
    %3 = vector.broadcast %0 : f32 to vector<4x512xf32>
    %4 = arith.subf %2, %3 : vector<4x512xf32>
    %5 = arith.mulf %4, %4 : vector<4x512xf32>
    %6 = vector.broadcast %1 : f32 to vector<4x512xf32>
    %7 = arith.mulf %5, %6 : vector<4x512xf32>
    %8 = math.exp %7 : vector<4x512xf32>
    %c0_2 = arith.constant 0 : index
    %c0_3 = arith.constant 0 : index
    %9 = vector.load %arg3[%c0_2, %c0_3] : memref<4x512xf32, #tpu.memory_space<vmem>>, vector<4x512xf32>
    tpu.vector_store %arg3[%c0_2, %c0_3], %8 {strides = array<i32>} : memref<4x512xf32, #tpu.memory_space<vmem>>, vector<4x512xf32>,
    return
  }
  func.func @transform_0(%arg0: i32, %arg1: memref<2xf32, #tpu.memory_space<smem>>) -> (i32, i32) {
    %c0_i32 = arith.constant 0 : i32
    %c0_i32_0 = arith.constant 0 : i32
    return %arg0, %c0_i32 : i32, i32
  }
  func.func @transform_1(%arg0: i32, %arg1: memref<2xf32, #tpu.memory_space<smem>>) -> (i32, i32) {
    %c0_i32 = arith.constant 0 : i32
    %c0_i32_0 = arith.constant 0 : i32
    return %arg0, %c0_i32 : i32, i32
  }
}

</mosaic_0001>

<bundles_post_ra>
// kernel: tpu_custom_call.1
= control target key start
LH: loop header
LB: loop body
LE: loop exit
PB: predicated region body
PF: predicated region fallthrough
CT: control target
= control target key end

     0   :  { %s181_s0 = inlined_call_operand.hbm [shape: f32[2], index: 0, kind: input, shape index: {}]   ;;  %s182_s1 = inlined_call_operand.hbm [shape: f32[4,512], index: 1, kind: input, shape index: {}]   ;;  %s183_s2 = inlined_call_operand.hbm [shape: f32[4,512], index: 2, kind: output, shape index: {}]  }
   0x1   :  { %s67_s11 = scalar_lea.hbm %s181_s0, 16 }
   0x2   :  { %p68_p0 = scmp.ne.s32.totalorder %s181_s0, %s67_s11  ;;  %p71_p1 = scmp.lt.u32.totalorder %s67_s11, %s181_s0 }
   0x4   :  { %p73_p2 = pnand %p71_p1, %p68_p0 }
   0x6   :  { %76 = shalt.err (!%p73_p2)  }
   0x7   :  { %s127_s16 = smov [#allocation3]  }
   0x8   :  { %8 = dma.hbm_to_smem %s181_s0, 16, %s127_s16, [#allocation2] }
   0x9   :  { %121 = dma.done.wait [#allocation2], 16 }
   0xa   :  { %122 = vsyncadd [#allocation2], 4294967280 }
   0xb   :  { %10 = sfence }
   0xc   :  { %11 = vsyncpa [#allocation5], 0 }
   0xd   :  { %12 = vsyncpa [#allocation6], 0  ;;  %s128_s19 = smov [#allocation4]   ;;  %s77_s23 = scalar_lea.hbm %s182_s1, 256 }
   0xe   :  { %s19_s20 = sshll.u32 %s128_s19, 4  ;;  %p78_p3 = scmp.ne.s32.totalorder %s182_s1, %s77_s23  ;;  %s20_s20 = int_to_ptr.vmem [resolvable:$true] %s19_s20 }
   0xf   :  { %p81_p4 = scmp.lt.u32.totalorder %s77_s23, %s182_s1 }
  0x11   :  { %p83_p5 = pnand %p81_p4, %p78_p3 }
  0x13   :  { %86 = shalt.err (!%p83_p5)
}
  0x14   :  { %s87_s0 = scalar_lea.vmem %s20_s20, 256  ;;  %p92_p7 = scmp.lt.s32.totalorder %s20_s20, %s20_s20 }
  0x15   :  { %p88_p6 = scmp.ne.s32.totalorder %s20_s20, %s87_s0  ;;  %p93_p8 = scmp.lt.s32.totalorder %s87_s0, %s87_s0 }
  0x17   :  { %p94_p9 = por %p93_p8, %p92_p7 }
  0x19   :  { %p95_p10 = pnand %p94_p9, %p88_p6 }
  0x1b   :  { %98 = shalt.err (!%p95_p10)
}
  0x1c   :  { %22 = dma.hbm_to_vmem [thread:$0]  %s182_s1, 256, %s20_s20, [#allocation5]  }
  0x1d   :  { %123 = dma.done.wait [#allocation5], 256  }
  0x1e   :  { %124 = vsyncadd [#allocation5], 4294967040  ;;  %s26_s30 = sld [smem:[#allocation3]]  ;;  %s59_s3 = sld [smem:[#allocation3 + $0x1]]  ;;  %v28_v1 = vld [vmem:[#allocation4] sm:$0xff]  ;;  %v29_v2 = vld [vmem:[#allocation4 + $0x8] sm:$0xff] }
  0x1f   :  { %s129_s4 = smov [#allocation7]  }
  0x20   :  { %s50_s1 = sshll.u32 %s129_s4, 4  ;;  %s51_s1 = int_to_ptr.vmem [resolvable:$true] %s50_s1 }
  0x21   :  { %s99_s5 = scalar_lea.vmem %s51_s1, 256  ;;  %p104_p12 = scmp.lt.s32.totalorder %s51_s1, %s51_s1 }
  0x22   :  { %p100_p11 = scmp.ne.s32.totalorder %s51_s1, %s99_s5  ;;  %p105_p13 = scmp.lt.s32.totalorder %s99_s5, %s99_s5 }
  0x24   :  { %v30_v0 = vstv %s26_s30  ;;  %v35_v5 = vstv %s59_s3  ;;  %p106_p0 = por %p105_p13, %p104_p12 }
  0x25   :  { %v31_v3 = vsub.f32 %v28_v1, %v30_v0  ;;  %v32_v4 = vsub.f32 %v29_v2, %v30_v0 }
  0x26   :  { %p107_p1 = pnand %p106_p0, %p100_p11 }
  0x27   :  { %v33_v6 = vmul.f32 %v31_v3, %v31_v3  ;;  %v34_v7 = vmul.f32 %v32_v4, %v32_v4 }
  0x29   :  { %v36_v8 = vmul.f32 %v35_v5, %v33_v6  ;;  %v37_v9 = vmul.f32 %v35_v5, %v34_v7 }
  0x2b   :  { %v38_v10 = vmul.f32 1.442695, %v36_v8  ;;  %v40_v11 = vmul.f32 1.442695, %v37_v9 }
  0x2d   :  { %63 = vpow2.f32 %v38_v10 }
  0x2e   :  { %65 = vpow2.f32 %v40_v11 }
  0x37   :  { %v64_v12 = vpop.eup %63 }
  0x38   :  { %v66_v13 = vpop.eup %65  ;;  %42 = vst [vmem:[#allocation7] sm:$0xff] %v64_v12 }
  0x39   :  { %43 = vst [vmem:[#allocation7 + $0x8] sm:$0xff] %v66_v13 }
  0x3a   :  { %110 = shalt.err (!%p107_p1)
}
  0x3b   :  { %s111_s8 = scalar_lea.hbm %s183_s2, 256 }
  0x3c   :  { %p112_p2 = scmp.ne.s32.totalorder %s183_s2, %s111_s8  ;;  %p115_p3 = scmp.lt.u32.totalorder %s111_s8, %s183_s2 }
  0x3e   :  { %p117_p4 = pnand %p115_p3, %p112_p2 }
  0x40   :  { %120 = shalt.err (!%p117_p4)
}
  0x41   :  { %53 = dma.vmem_to_hbm [thread:$0]  %s51_s1, 256, %s183_s2, [#allocation6]  }
  0x42   :  { %125 = dma.done.wait [#allocation6], 256  }
  0x43   :  { %126 = vsyncadd [#allocation6], 4294967040 }
  0x44   :  { %57 = vsyncpa [#allocation5], 1 }
  0x45   :  { %58 = vsyncpa [#allocation6], 1 }

</bundles_post_ra>
